<compile_context>
chip_gen: v5e
topology: v5e:2x2
jax: 0.10.0
libtpu: 0.0.40
codegen_flags: <defaults>
</compile_context>

<pallas_src>
import functools

import jax
import jax.numpy as jnp
from jax import lax
from jax.experimental import pallas as pl
from jax.experimental.pallas import tpu as pltpu


# ----------------------------- fused Pallas kernel ------------------------------


def _fused_mha_kernel(
    q_ref, k_ref, v_ref,
    wq_ref, bq_ref, wk_ref, bk_ref, wv_ref, bv_ref,
    wo_ref, bo_ref,
    o_ref,
    acc_ref,
    *, b_tile, n_q, n_k, n_head, d_k, d_v, inv_scale, compute_dtype,
):
    # q_ref: (b_tile*n_q, d_model)   k_ref/v_ref: (b_tile*n_k, d_model)
    # Weights are already bf16 (cast once in the wrapper); biases are f32.

    # --- Q/K/V projections for the whole batch tile, all heads at once (one MXU matmul
    #     each, bf16 operands, f32 accumulation + bias). ---
    q2 = q_ref[...].astype(compute_dtype)
    k2 = k_ref[...].astype(compute_dtype)
    v2 = v_ref[...].astype(compute_dtype)

    qp = jnp.dot(q2, wq_ref[...], preferred_element_type=jnp.float32) + bq_ref[...]
    kp = jnp.dot(k2, wk_ref[...], preferred_element_type=jnp.float32) + bk_ref[...]
    vp = jnp.dot(v2, wv_ref[...], preferred_element_type=jnp.float32) + bv_ref[...]

    # Scale Q once (M x n_head*d_k elems) instead of the (n_q, n_k) scores per head,
    # then drop matmul operands back to bf16.  Softmax stats stay f32.
    qp = (qp * inv_scale).astype(compute_dtype)
    kp = kp.astype(compute_dtype)
    vp = vp.astype(compute_dtype)
    wo = wo_ref[...]                              # (n_head*d_v, d_o) bf16, VMEM-resident

    # Initialize the f32 VMEM accumulator with the output bias (broadcasts over rows).
    acc_ref[...] = jnp.zeros_like(acc_ref) + bo_ref[...]

    # Contract last axis of both operands: s = q @ k^T without an explicit transpose.
    contract_last = (((1,), (1,)), ((), ()))

    # Static unroll over the (small) batch tile; attention is per batch element.
    for b in range(b_tile):
        qp_b = qp[b * n_q:(b + 1) * n_q]          # (n_q, n_head*d_k)
        kp_b = kp[b * n_k:(b + 1) * n_k]          # (n_k, n_head*d_k)
        vp_b = vp[b * n_k:(b + 1) * n_k]          # (n_k, n_head*d_v)

        # TODO(synk): for large n_head use lax.fori_loop (or a grid axis) to bound vreg
        # live ranges, and a head-major 128-lane-aligned weight layout so the d_k-wide
        # slices below don't force a lane relayout per head at production sizes.
        for h in range(n_head):                   # static unroll over heads
            qh = qp_b[:, h * d_k:(h + 1) * d_k]   # (n_q, d_k)  bf16, already scaled
            kh = kp_b[:, h * d_k:(h + 1) * d_k]   # (n_k, d_k)  bf16
            vh = vp_b[:, h * d_v:(h + 1) * d_v]   # (n_k, d_v)  bf16

            s = lax.dot_general(qh, kh, contract_last,
                                preferred_element_type=jnp.float32)   # (n_q, n_k) f32
            m = jnp.max(s, axis=-1, keepdims=True)                    # f32 softmax stats
            p = jnp.exp(s - m)
            l = jnp.sum(p, axis=-1, keepdims=True)
            p = (p * pl.reciprocal(l, approx=True)).astype(compute_dtype)  # EUP recip

            o_h = jnp.dot(p, vh, preferred_element_type=jnp.float32)  # (n_q, d_v)

            # Fused head-merge + output projection:
            #   concat_h(o_h) @ Wo  ==  sum_h  o_h @ Wo[h*d_v:(h+1)*d_v, :]
            acc_ref[pl.ds(b * n_q, n_q), :] += jnp.dot(
                o_h.astype(compute_dtype),
                wo[h * d_v:(h + 1) * d_v, :],
                preferred_element_type=jnp.float32)

    # One lane/row-dense slab store per grid step.
    o_ref[...] = acc_ref[...].astype(o_ref.dtype)


# --------------------------- module (forward) -------------------------------


def init_mha_params(key, n_head, d_model, d_k, d_v, d_o):
    """Deterministic parameter init (same shapes as the PyTorch nn.Linear layers).

    PyTorch Linear stores weight as (out, in); we keep them as (in, out) so the
    kernel computes x @ W + b directly.
    """
    ks = jax.random.split(key, 8)

    def lin(kw, kb, din, dout):
        w = jax.random.normal(kw, (din, dout), jnp.float32) * 0.05
        b = jax.random.normal(kb, (dout,), jnp.float32) * 0.05
        return w, b

    wq, bq = lin(ks[0], ks[1], d_model, n_head * d_k)
    wk, bk = lin(ks[2], ks[3], d_model, n_head * d_k)
    wv, bv = lin(ks[4], ks[5], d_model, n_head * d_v)
    wo, bo = lin(ks[6], ks[7], n_head * d_v, d_o)
    return dict(wq=wq, bq=bq, wk=wk, bk=bk, wv=wv, bv=bv, wo=wo, bo=bo)


def _pick_b_tile(batch, n_q, target_rows=256, min_rows_for_split=128):
    """Largest divisor of `batch` keeping per-step projection rows <= target_rows
    (v6e/v7x MXU fill target; 128 is the natural v5e fill).  Prefers >=2 grid steps
    (v7x dual-TC sharding) only when that still leaves >=128 rows per step."""
    divisors = [d for d in range(1, batch + 1) if batch % d == 0]
    candidates = [d for d in divisors if d * n_q <= target_rows] or [1]
    bt = max(candidates)
    split_ok = [d for d in candidates
                if batch // d >= 2 and d * n_q >= min_rows_for_split]
    if split_ok:
        bt = max(split_ok)
    return bt


def multi_head_attention(params, q, k, v, n_head, d_k, d_v,
                         *, compute_dtype=jnp.bfloat16, b_tile=None):
    batch, n_q, d_model = q.shape
    _, n_k, _ = k.shape
    _, n_v, _ = v.shape
    assert n_v == n_k, "kernel requires n_v == n_k (values aligned with keys)"
    d_o = params["wo"].shape[1]
    d_qk = n_head * d_k
    d_vv = n_head * d_v
    inv_scale = 1.0 / (float(d_k) ** 0.5)

    if b_tile is None:
        b_tile = _pick_b_tile(batch, n_q)
    assert batch % b_tile == 0, (batch, b_tile)
    n_steps = batch // b_tile

    # Flatten activations to 2-D so each grid step is a (rows, feature) slab — the
    # projections then run with M = b_tile*n_q rows per MXU matmul.
    q2 = q.reshape(batch * n_q, d_model)
    k2 = k.reshape(batch * n_k, d_model)
    v2 = v.reshape(batch * n_k, d_model)

    # Weights as bf16 (MXU-native on v5e/v6e/v7x, half the resident VMEM); biases f32.
    wq = params["wq"].astype(compute_dtype)
    wk = params["wk"].astype(compute_dtype)
    wv = params["wv"].astype(compute_dtype)
    wo = params["wo"].astype(compute_dtype)
    bq = params["bq"].reshape(1, -1)
    bk = params["bk"].reshape(1, -1)
    bv = params["bv"].reshape(1, -1)
    bo = params["bo"].reshape(1, -1)

    kernel = functools.partial(
        _fused_mha_kernel,
        b_tile=b_tile, n_q=n_q, n_k=n_k, n_head=n_head, d_k=d_k, d_v=d_v,
        inv_scale=inv_scale, compute_dtype=compute_dtype,
    )

    out2 = pl.pallas_call(
        kernel,
        out_shape=jax.ShapeDtypeStruct((batch * n_q, d_o), jnp.float32),
        grid_spec=pltpu.PrefetchScalarGridSpec(
            num_scalar_prefetch=0,
            grid=(n_steps,),
            in_specs=[
                # activations: one batch tile (b_tile*rows slab) per grid step
                pl.BlockSpec((b_tile * n_q, d_model), lambda i: (i, 0)),
                pl.BlockSpec((b_tile * n_k, d_model), lambda i: (i, 0)),
                pl.BlockSpec((b_tile * n_k, d_model), lambda i: (i, 0)),
                # weights / biases: constant index maps -> stay VMEM-resident across steps
                # (at v7x production sizes: stream these in tiles + single-buffer instead)
                pl.BlockSpec((d_model, d_qk), lambda i: (0, 0)),
                pl.BlockSpec((1, d_qk), lambda i: (0, 0)),
                pl.BlockSpec((d_model, d_qk), lambda i: (0, 0)),
                pl.BlockSpec((1, d_qk), lambda i: (0, 0)),
                pl.BlockSpec((d_model, d_vv), lambda i: (0, 0)),
                pl.BlockSpec((1, d_vv), lambda i: (0, 0)),
                pl.BlockSpec((d_vv, d_o), lambda i: (0, 0)),
                pl.BlockSpec((1, d_o), lambda i: (0, 0)),
            ],
            out_specs=pl.BlockSpec((b_tile * n_q, d_o), lambda i: (i, 0)),
            scratch_shapes=[pltpu.VMEM((b_tile * n_q, d_o), jnp.float32)],
        ),
        compiler_params=pltpu.CompilerParams(
            dimension_semantics=("parallel",),   # shards batch tiles across TCs on v7x
        ),
    )(q2, k2, v2, wq, bq, wk, bk, wv, bv, wo, bo)

    return out2.reshape(batch, n_q, d_o)


# ------------------------------ reference -----------------------------------


def reference_mha(params, q, k, v, n_head, d_k, d_v):
    batch, n_q, d_model = q.shape
    _, n_k, _ = k.shape
    qp = q.reshape(-1, d_model) @ params["wq"] + params["bq"]
    kp = k.reshape(-1, d_model) @ params["wk"] + params["bk"]
    vp = v.reshape(-1, d_model) @ params["wv"] + params["bv"]

    def split_heads(x, n, d):
        return (
            x.reshape(batch, n, n_head, d)
            .transpose(2, 0, 1, 3)
            .reshape(n_head * batch, n, d)
        )

    qh = split_heads(qp, n_q, d_k)
    kh = split_heads(kp, n_k, d_k)
    vh = split_heads(vp, n_k, d_v)
    s = jnp.einsum("bqd,bkd->bqk", qh, kh) / (float(d_k) ** 0.5)
    p = jax.nn.softmax(s, axis=-1)
    o = jnp.einsum("bqk,bkd->bqd", p, vh)
    o = (
        o.reshape(n_head, batch, n_q, d_v)
        .transpose(1, 2, 0, 3)
        .reshape(batch, n_q, n_head * d_v)
    )
    o = o.reshape(batch * n_q, -1) @ params["wo"] + params["bo"]
    return o.reshape(batch, n_q, -1)


# ------------------------------- main ----------------------------------------

if __name__ == "__main__":
    n_head, d_model, d_k, d_v, d_o = 2, 32, 16, 16, 32
    batch, n_q, n_k = 2, 8, 8

    key = jax.random.PRNGKey(0)
    kp_, kq_, kk_, kv_ = jax.random.split(key, 4)
    params = init_mha_params(kp_, n_head, d_model, d_k, d_v, d_o)

    q = jax.random.normal(kq_, (batch, n_q, d_model), jnp.float32)
    k = jax.random.normal(kk_, (batch, n_k, d_model), jnp.float32)
    v = jax.random.normal(kv_, (batch, n_k, d_model), jnp.float32)

    out = multi_head_attention(params, q, k, v, n_head, d_k, d_v)
    out = jax.block_until_ready(out)

    ref = reference_mha(params, q, k, v, n_head, d_k, d_v)
    assert out.shape == (batch, n_q, d_o), out.shape
    # tolerance covers bf16 MXU operands + the approximate (EUP) softmax reciprocal;
    # the f32 reference is the PyTorch-equivalent math
    assert jnp.allclose(out, ref, atol=3e-2, rtol=3e-2), (
        float(jnp.max(jnp.abs(out - ref)))
    )
    print("KERNEL_OK")
</pallas_src>

<mosaic_0001>
module attributes {stable_mosaic.version = 11 : i64} {
  func.func @_fused_mha_kernel(%arg0: i32, %arg1: memref<16x32xf32, #tpu.memory_space<vmem>>, %arg2: memref<16x32xf32, #tpu.memory_space<vmem>>, %arg3: memref<16x32xf32, #tpu.memory_space<vmem>>, %arg4: memref<32x32xbf16, #tpu.memory_space<vmem>>, %arg5: memref<1x32xf32, #tpu.memory_space<vmem>>, %arg6: memref<32x32xbf16, #tpu.memory_space<vmem>>, %arg7: memref<1x32xf32, #tpu.memory_space<vmem>>, %arg8: memref<32x32xbf16, #tpu.memory_space<vmem>>, %arg9: memref<1x32xf32, #tpu.memory_space<vmem>>, %arg10: memref<32x32xbf16, #tpu.memory_space<vmem>>, %arg11: memref<1x32xf32, #tpu.memory_space<vmem>>, %arg12: memref<16x32xf32, #tpu.memory_space<vmem>>, %arg13: memref<16x32xf32, #tpu.memory_space<vmem>>) attributes {dimension_semantics = [#tpu.dimension_semantics<parallel>], iteration_bounds = array<i64: 1>, scalar_prefetch = 0 : i64, scratch_operands = 1 : i64, tpu.core_type = #tpu.core_type<tc>, window_params = [{transform_indices = @transform_0, window_bounds = array<i64: 16, 32>}, {transform_indices = @transform_1, window_bounds = array<i64: 16, 32>}, {transform_indices = @transform_2, window_bounds = array<i64: 16, 32>}, {pipeline_mode = #tpu.pipeline_mode<synchronous>, transform_indices = @transform_3, window_bounds = array<i64: 32, 32>}, {pipeline_mode = #tpu.pipeline_mode<synchronous>, transform_indices = @transform_4, window_bounds = array<i64: 1, 32>}, {pipeline_mode = #tpu.pipeline_mode<synchronous>, transform_indices = @transform_5, window_bounds = array<i64: 32, 32>}, {pipeline_mode = #tpu.pipeline_mode<synchronous>, transform_indices = @transform_6, window_bounds = array<i64: 1, 32>}, {pipeline_mode = #tpu.pipeline_mode<synchronous>, transform_indices = @transform_7, window_bounds = array<i64: 32, 32>}, {pipeline_mode = #tpu.pipeline_mode<synchronous>, transform_indices = @transform_8, window_bounds = array<i64: 1, 32>}, {pipeline_mode = #tpu.pipeline_mode<synchronous>, transform_indices = @transform_9, window_bounds = array<i64: 32, 32>}, {pipeline_mode = #tpu.pipeline_mode<synchronous>, transform_indices = @transform_10, window_bounds = array<i64: 1, 32>}, {transform_indices = @transform_11, window_bounds = array<i64: 16, 32>}]} {
    %c0 = arith.constant 0 : index
    %c0_0 = arith.constant 0 : index
    %0 = vector.load %arg1[%c0, %c0_0] : memref<16x32xf32, #tpu.memory_space<vmem>>, vector<16x32xf32>
    %1 = arith.truncf %0 : vector<16x32xf32> to vector<16x32xbf16>
    %c0_1 = arith.constant 0 : index
    %c0_2 = arith.constant 0 : index
    %2 = vector.load %arg2[%c0_1, %c0_2] : memref<16x32xf32, #tpu.memory_space<vmem>>, vector<16x32xf32>
    %3 = arith.truncf %2 : vector<16x32xf32> to vector<16x32xbf16>
    %c0_3 = arith.constant 0 : index
    %c0_4 = arith.constant 0 : index
    %4 = vector.load %arg3[%c0_3, %c0_4] : memref<16x32xf32, #tpu.memory_space<vmem>>, vector<16x32xf32>
    %5 = arith.truncf %4 : vector<16x32xf32> to vector<16x32xbf16>
    %c0_5 = arith.constant 0 : index
    %c0_6 = arith.constant 0 : index
    %6 = vector.load %arg4[%c0_5, %c0_6] : memref<32x32xbf16, #tpu.memory_space<vmem>>, vector<32x32xbf16>
    %cst = arith.constant dense<0.000000e+00> : vector<16x32xf32>
    %7 = tpu.matmul %1, %6, %cst {dimension_numbers = #tpu.dot_dimension_numbers<[1], [0], [0], [1], [0, 0, 1, 1], [], []>} : vector<16x32xbf16>, vector<32x32xbf16>, vector<16x32xf32> -> vector<16x32xf32>
    %c0_7 = arith.constant 0 : index
    %c0_8 = arith.constant 0 : index
    %8 = vector.load %arg5[%c0_7, %c0_8] : memref<1x32xf32, #tpu.memory_space<vmem>>, vector<1x32xf32>
    %9 = vector.broadcast %8 : vector<1x32xf32> to vector<16x32xf32>
    %10 = arith.addf %7, %9 : vector<16x32xf32>
    %c0_9 = arith.constant 0 : index
    %c0_10 = arith.constant 0 : index
    %11 = vector.load %arg6[%c0_9, %c0_10] : memref<32x32xbf16, #tpu.memory_space<vmem>>, vector<32x32xbf16>
    %cst_11 = arith.constant dense<0.000000e+00> : vector<16x32xf32>
    %12 = tpu.matmul %3, %11, %cst_11 {dimension_numbers = #tpu.dot_dimension_numbers<[1], [0], [0], [1], [0, 0, 1, 1], [], []>} : vector<16x32xbf16>, vector<32x32xbf16>, vector<16x32xf32> -> vector<16x32xf32>
    %c0_12 = arith.constant 0 : index
    %c0_13 = arith.constant 0 : index
    %13 = vector.load %arg7[%c0_12, %c0_13] : memref<1x32xf32, #tpu.memory_space<vmem>>, vector<1x32xf32>
    %14 = vector.broadcast %13 : vector<1x32xf32> to vector<16x32xf32>
    %15 = arith.addf %12, %14 : vector<16x32xf32>
    %c0_14 = arith.constant 0 : index
    %c0_15 = arith.constant 0 : index
    %16 = vector.load %arg8[%c0_14, %c0_15] : memref<32x32xbf16, #tpu.memory_space<vmem>>, vector<32x32xbf16>
    %cst_16 = arith.constant dense<0.000000e+00> : vector<16x32xf32>
    %17 = tpu.matmul %5, %16, %cst_16 {dimension_numbers = #tpu.dot_dimension_numbers<[1], [0], [0], [1], [0, 0, 1, 1], [], []>} : vector<16x32xbf16>, vector<32x32xbf16>, vector<16x32xf32> -> vector<16x32xf32>
    %c0_17 = arith.constant 0 : index
    %c0_18 = arith.constant 0 : index
    %18 = vector.load %arg9[%c0_17, %c0_18] : memref<1x32xf32, #tpu.memory_space<vmem>>, vector<1x32xf32>
    %19 = vector.broadcast %18 : vector<1x32xf32> to vector<16x32xf32>
    %20 = arith.addf %17, %19 : vector<16x32xf32>
    %cst_19 = arith.constant 2.500000e-01 : f32
    %21 = vector.broadcast %cst_19 : f32 to vector<16x32xf32>
    %22 = arith.mulf %10, %21 : vector<16x32xf32>
    %23 = arith.truncf %22 : vector<16x32xf32> to vector<16x32xbf16>
    %24 = arith.truncf %15 : vector<16x32xf32> to vector<16x32xbf16>
    %25 = arith.truncf %20 : vector<16x32xf32> to vector<16x32xbf16>
    %c0_20 = arith.constant 0 : index
    %c0_21 = arith.constant 0 : index
    %26 = vector.load %arg10[%c0_20, %c0_21] : memref<32x32xbf16, #tpu.memory_space<vmem>>, vector<32x32xbf16>
    %cst_22 = arith.constant 0.000000e+00 : f32
    %27 = vector.broadcast %cst_22 : f32 to vector<16x32xf32>
    %c0_23 = arith.constant 0 : index
    %c0_24 = arith.constant 0 : index
    %28 = vector.load %arg11[%c0_23, %c0_24] : memref<1x32xf32, #tpu.memory_space<vmem>>, vector<1x32xf32>
    %29 = vector.broadcast %28 : vector<1x32xf32> to vector<16x32xf32>
    %30 = arith.addf %27, %29 : vector<16x32xf32>
    %c0_25 = arith.constant 0 : index
    %c0_26 = arith.constant 0 : index
    %31 = vector.load %arg13[%c0_25, %c0_26] : memref<16x32xf32, #tpu.memory_space<vmem>>, vector<16x32xf32>
    tpu.vector_store %arg13[%c0_25, %c0_26], %30 {strides = array<i32>} : memref<16x32xf32, #tpu.memory_space<vmem>>, vector<16x32xf32>,
    %32 = vector.extract_strided_slice %23 {offsets = [0, 0], sizes = [8, 32], strides = [1, 1]} : vector<16x32xbf16> to vector<8x32xbf16>
    %33 = vector.extract_strided_slice %24 {offsets = [0, 0], sizes = [8, 32], strides = [1, 1]} : vector<16x32xbf16> to vector<8x32xbf16>
    %34 = vector.extract_strided_slice %25 {offsets = [0, 0], sizes = [8, 32], strides = [1, 1]} : vector<16x32xbf16> to vector<8x32xbf16>
    %35 = vector.extract_strided_slice %32 {offsets = [0, 0], sizes = [8, 16], strides = [1, 1]} : vector<8x32xbf16> to vector<8x16xbf16>
    %36 = vector.extract_strided_slice %33 {offsets = [0, 0], sizes = [8, 16], strides = [1, 1]} : vector<8x32xbf16> to vector<8x16xbf16>
    %37 = vector.extract_strided_slice %34 {offsets = [0, 0], sizes = [8, 16], strides = [1, 1]} : vector<8x32xbf16> to vector<8x16xbf16>
    %cst_27 = arith.constant dense<0.000000e+00> : vector<8x8xf32>
    %38 = tpu.matmul %35, %36, %cst_27 {dimension_numbers = #tpu.dot_dimension_numbers<[1], [1], [0], [0], [0, 0, 1, 0], [], []>} : vector<8x16xbf16>, vector<8x16xbf16>, vector<8x8xf32> -> vector<8x8xf32>
    %cst_28 = arith.constant dense<0xFF800000> : vector<8xf32>
    %39 = vector.multi_reduction <maximumf>, %38, %cst_28 [1] : vector<8x8xf32> to vector<8xf32>
    %40 = vector.shape_cast %39 : vector<8xf32> to vector<8x1xf32>
    %41 = vector.broadcast %40 : vector<8x1xf32> to vector<8x8xf32>
    %42 = arith.subf %38, %41 : vector<8x8xf32>
    %43 = math.exp %42 : vector<8x8xf32>
    %cst_29 = arith.constant dense<0.000000e+00> : vector<8xf32>
    %44 = vector.multi_reduction <add>, %43, %cst_29 [1] : vector<8x8xf32> to vector<8xf32>
    %45 = vector.shape_cast %44 : vector<8xf32> to vector<8x1xf32>
    %46 = tpu.reciprocal %45 {approx = true} : vector<8x1xf32> -> vector<8x1xf32>
    %47 = vector.broadcast %46 : vector<8x1xf32> to vector<8x8xf32>
    %48 = arith.mulf %43, %47 : vector<8x8xf32>
    %49 = arith.truncf %48 : vector<8x8xf32> to vector<8x8xbf16>
    %cst_30 = arith.constant dense<0.000000e+00> : vector<8x16xf32>
    %50 = tpu.matmul %49, %37, %cst_30 {dimension_numbers = #tpu.dot_dimension_numbers<[1], [0], [0], [1], [0, 0, 1, 1], [], []>} : vector<8x8xbf16>, vector<8x16xbf16>, vector<8x16xf32> -> vector<8x16xf32>
    %c0_31 = arith.constant 0 : index
    %c0_32 = arith.constant 0 : index
    %51 = vector.load %arg13[%c0_31, %c0_32] : memref<16x32xf32, #tpu.memory_space<vmem>>, vector<8x32xf32>
    %52 = arith.truncf %50 : vector<8x16xf32> to vector<8x16xbf16>
    %53 = vector.extract_strided_slice %26 {offsets = [0, 0], sizes = [16, 32], strides = [1, 1]} : vector<32x32xbf16> to vector<16x32xbf16>
    %cst_33 = arith.constant dense<0.000000e+00> : vector<8x32xf32>
    %54 = tpu.matmul %52, %53, %cst_33 {dimension_numbers = #tpu.dot_dimension_numbers<[1], [0], [0], [1], [0, 0, 1, 1], [], []>} : vector<8x16xbf16>, vector<16x32xbf16>, vector<8x32xf32> -> vector<8x32xf32>
    %55 = arith.addf %51, %54 : vector<8x32xf32>
    %c0_34 = arith.constant 0 : index
    %c0_35 = arith.constant 0 : index
    %56 = vector.load %arg13[%c0_34, %c0_35] : memref<16x32xf32, #tpu.memory_space<vmem>>, vector<8x32xf32>
    tpu.vector_store %arg13[%c0_34, %c0_35], %55 {strides = array<i32>} : memref<16x32xf32, #tpu.memory_space<vmem>>, vector<8x32xf32>,
    %57 = vector.extract_strided_slice %32 {offsets = [0, 16], sizes = [8, 16], strides = [1, 1]} : vector<8x32xbf16> to vector<8x16xbf16>
    %58 = vector.extract_strided_slice %33 {offsets = [0, 16], sizes = [8, 16], strides = [1, 1]} : vector<8x32xbf16> to vector<8x16xbf16>
    %59 = vector.extract_strided_slice %34 {offsets = [0, 16], sizes = [8, 16], strides = [1, 1]} : vector<8x32xbf16> to vector<8x16xbf16>
    %cst_36 = arith.constant dense<0.000000e+00> : vector<8x8xf32>
    %60 = tpu.matmul %57, %58, %cst_36 {dimension_numbers = #tpu.dot_dimension_numbers<[1], [1], [0], [0], [0, 0, 1, 0], [], []>} : vector<8x16xbf16>, vector<8x16xbf16>, vector<8x8xf32> -> vector<8x8xf32>
    %cst_37 = arith.constant dense<0xFF800000> : vector<8xf32>
    %61 = vector.multi_reduction <maximumf>, %60, %cst_37 [1] : vector<8x8xf32> to vector<8xf32>
    %62 = vector.shape_cast %61 : vector<8xf32> to vector<8x1xf32>
    %63 = vector.broadcast %62 : vector<8x1xf32> to vector<8x8xf32>
    %64 = arith.subf %60, %63 : vector<8x8xf32>
    %65 = math.exp %64 : vector<8x8xf32>
    %cst_38 = arith.constant dense<0.000000e+00> : vector<8xf32>
    %66 = vector.multi_reduction <add>, %65, %cst_38 [1] : vector<8x8xf32> to vector<8xf32>
    %67 = vector.shape_cast %66 : vector<8xf32> to vector<8x1xf32>
    %68 = tpu.reciprocal %67 {approx = true} : vector<8x1xf32> -> vector<8x1xf32>
    %69 = vector.broadcast %68 : vector<8x1xf32> to vector<8x8xf32>
    %70 = arith.mulf %65, %69 : vector<8x8xf32>
    %71 = arith.truncf %70 : vector<8x8xf32> to vector<8x8xbf16>
    %cst_39 = arith.constant dense<0.000000e+00> : vector<8x16xf32>
    %72 = tpu.matmul %71, %59, %cst_39 {dimension_numbers = #tpu.dot_dimension_numbers<[1], [0], [0], [1], [0, 0, 1, 1], [], []>} : vector<8x8xbf16>, vector<8x16xbf16>, vector<8x16xf32> -> vector<8x16xf32>
    %c0_40 = arith.constant 0 : index
    %c0_41 = arith.constant 0 : index
    %73 = vector.load %arg13[%c0_40, %c0_41] : memref<16x32xf32, #tpu.memory_space<vmem>>, vector<8x32xf32>
    %74 = arith.truncf %72 : vector<8x16xf32> to vector<8x16xbf16>
    %75 = vector.extract_strided_slice %26 {offsets = [16, 0], sizes = [16, 32], strides = [1, 1]} : vector<32x32xbf16> to vector<16x32xbf16>
    %cst_42 = arith.constant dense<0.000000e+00> : vector<8x32xf32>
    %76 = tpu.matmul %74, %75, %cst_42 {dimension_numbers = #tpu.dot_dimension_numbers<[1], [0], [0], [1], [0, 0, 1, 1], [], []>} : vector<8x16xbf16>, vector<16x32xbf16>, vector<8x32xf32> -> vector<8x32xf32>
    %77 = arith.addf %73, %76 : vector<8x32xf32>
    %c0_43 = arith.constant 0 : index
    %c0_44 = arith.constant 0 : index
    %78 = vector.load %arg13[%c0_43, %c0_44] : memref<16x32xf32, #tpu.memory_space<vmem>>, vector<8x32xf32>
    tpu.vector_store %arg13[%c0_43, %c0_44], %77 {strides = array<i32>} : memref<16x32xf32, #tpu.memory_space<vmem>>, vector<8x32xf32>,
    %79 = vector.extract_strided_slice %23 {offsets = [8, 0], sizes = [8, 32], strides = [1, 1]} : vector<16x32xbf16> to vector<8x32xbf16>
    %80 = vector.extract_strided_slice %24 {offsets = [8, 0], sizes = [8, 32], strides = [1, 1]} : vector<16x32xbf16> to vector<8x32xbf16>
    %81 = vector.extract_strided_slice %25 {offsets = [8, 0], sizes = [8, 32], strides = [1, 1]} : vector<16x32xbf16> to vector<8x32xbf16>
    %82 = vector.extract_strided_slice %79 {offsets = [0, 0], sizes = [8, 16], strides = [1, 1]} : vector<8x32xbf16> to vector<8x16xbf16>
    %83 = vector.extract_strided_slice %80 {offsets = [0, 0], sizes = [8, 16], strides = [1, 1]} : vector<8x32xbf16> to vector<8x16xbf16>
    %84 = vector.extract_strided_slice %81 {offsets = [0, 0], sizes = [8, 16], strides = [1, 1]} : vector<8x32xbf16> to vector<8x16xbf16>
    %cst_45 = arith.constant dense<0.000000e+00> : vector<8x8xf32>
    %85 = tpu.matmul %82, %83, %cst_45 {dimension_numbers = #tpu.dot_dimension_numbers<[1], [1], [0], [0], [0, 0, 1, 0], [], []>} : vector<8x16xbf16>, vector<8x16xbf16>, vector<8x8xf32> -> vector<8x8xf32>
    %cst_46 = arith.constant dense<0xFF800000> : vector<8xf32>
    %86 = vector.multi_reduction <maximumf>, %85, %cst_46 [1] : vector<8x8xf32> to vector<8xf32>
    %87 = vector.shape_cast %86 : vector<8xf32> to vector<8x1xf32>
    %88 = vector.broadcast %87 : vector<8x1xf32> to vector<8x8xf32>
    %89 = arith.subf %85, %88 : vector<8x8xf32>
    %90 = math.exp %89 : vector<8x8xf32>
    %cst_47 = arith.constant dense<0.000000e+00> : vector<8xf32>
    %91 = vector.multi_reduction <add>, %90, %cst_47 [1] : vector<8x8xf32> to vector<8xf32>
    %92 = vector.shape_cast %91 : vector<8xf32> to vector<8x1xf32>
    %93 = tpu.reciprocal %92 {approx = true} : vector<8x1xf32> -> vector<8x1xf32>
    %94 = vector.broadcast %93 : vector<8x1xf32> to vector<8x8xf32>
    %95 = arith.mulf %90, %94 : vector<8x8xf32>
    %96 = arith.truncf %95 : vector<8x8xf32> to vector<8x8xbf16>
    %cst_48 = arith.constant dense<0.000000e+00> : vector<8x16xf32>
    %97 = tpu.matmul %96, %84, %cst_48 {dimension_numbers = #tpu.dot_dimension_numbers<[1], [0], [0], [1], [0, 0, 1, 1], [], []>} : vector<8x8xbf16>, vector<8x16xbf16>, vector<8x16xf32> -> vector<8x16xf32>
    %c8 = arith.constant 8 : index
    %c0_49 = arith.constant 0 : index
    %98 = vector.load %arg13[%c8, %c0_49] : memref<16x32xf32, #tpu.memory_space<vmem>>, vector<8x32xf32>
    %99 = arith.truncf %97 : vector<8x16xf32> to vector<8x16xbf16>
    %100 = vector.extract_strided_slice %26 {offsets = [0, 0], sizes = [16, 32], strides = [1, 1]} : vector<32x32xbf16> to vector<16x32xbf16>
    %cst_50 = arith.constant dense<0.000000e+00> : vector<8x32xf32>
    %101 = tpu.matmul %99, %100, %cst_50 {dimension_numbers = #tpu.dot_dimension_numbers<[1], [0], [0], [1], [0, 0, 1, 1], [], []>} : vector<8x16xbf16>, vector<16x32xbf16>, vector<8x32xf32> -> vector<8x32xf32>
    %102 = arith.addf %98, %101 : vector<8x32xf32>
    %c8_51 = arith.constant 8 : index
    %c0_52 = arith.constant 0 : index
    %103 = vector.load %arg13[%c8_51, %c0_52] : memref<16x32xf32, #tpu.memory_space<vmem>>, vector<8x32xf32>
    tpu.vector_store %arg13[%c8_51, %c0_52], %102 {strides = array<i32>} : memref<16x32xf32, #tpu.memory_space<vmem>>, vector<8x32xf32>,
    %104 = vector.extract_strided_slice %79 {offsets = [0, 16], sizes = [8, 16], strides = [1, 1]} : vector<8x32xbf16> to vector<8x16xbf16>
    %105 = vector.extract_strided_slice %80 {offsets = [0, 16], sizes = [8, 16], strides = [1, 1]} : vector<8x32xbf16> to vector<8x16xbf16>
    %106 = vector.extract_strided_slice %81 {offsets = [0, 16], sizes = [8, 16], strides = [1, 1]} : vector<8x32xbf16> to vector<8x16xbf16>
    %cst_53 = arith.constant dense<0.000000e+00> : vector<8x8xf32>
    %107 = tpu.matmul %104, %105, %cst_53 {dimension_numbers = #tpu.dot_dimension_numbers<[1], [1], [0], [0], [0, 0, 1, 0], [], []>} : vector<8x16xbf16>, vector<8x16xbf16>, vector<8x8xf32> -> vector<8x8xf32>
    %cst_54 = arith.constant dense<0xFF800000> : vector<8xf32>
    %108 = vector.multi_reduction <maximumf>, %107, %cst_54 [1] : vector<8x8xf32> to vector<8xf32>
    %109 = vector.shape_cast %108 : vector<8xf32> to vector<8x1xf32>
    %110 = vector.broadcast %109 : vector<8x1xf32> to vector<8x8xf32>
    %111 = arith.subf %107, %110 : vector<8x8xf32>
    %112 = math.exp %111 : vector<8x8xf32>
    %cst_55 = arith.constant dense<0.000000e+00> : vector<8xf32>
    %113 = vector.multi_reduction <add>, %112, %cst_55 [1] : vector<8x8xf32> to vector<8xf32>
    %114 = vector.shape_cast %113 : vector<8xf32> to vector<8x1xf32>
    %115 = tpu.reciprocal %114 {approx = true} : vector<8x1xf32> -> vector<8x1xf32>
    %116 = vector.broadcast %115 : vector<8x1xf32> to vector<8x8xf32>
    %117 = arith.mulf %112, %116 : vector<8x8xf32>
    %118 = arith.truncf %117 : vector<8x8xf32> to vector<8x8xbf16>
    %cst_56 = arith.constant dense<0.000000e+00> : vector<8x16xf32>
    %119 = tpu.matmul %118, %106, %cst_56 {dimension_numbers = #tpu.dot_dimension_numbers<[1], [0], [0], [1], [0, 0, 1, 1], [], []>} : vector<8x8xbf16>, vector<8x16xbf16>, vector<8x16xf32> -> vector<8x16xf32>
    %c8_57 = arith.constant 8 : index
    %c0_58 = arith.constant 0 : index
    %120 = vector.load %arg13[%c8_57, %c0_58] : memref<16x32xf32, #tpu.memory_space<vmem>>, vector<8x32xf32>
    %121 = arith.truncf %119 : vector<8x16xf32> to vector<8x16xbf16>
    %122 = vector.extract_strided_slice %26 {offsets = [16, 0], sizes = [16, 32], strides = [1, 1]} : vector<32x32xbf16> to vector<16x32xbf16>
    %cst_59 = arith.constant dense<0.000000e+00> : vector<8x32xf32>
    %123 = tpu.matmul %121, %122, %cst_59 {dimension_numbers = #tpu.dot_dimension_numbers<[1], [0], [0], [1], [0, 0, 1, 1], [], []>} : vector<8x16xbf16>, vector<16x32xbf16>, vector<8x32xf32> -> vector<8x32xf32>
    %124 = arith.addf %120, %123 : vector<8x32xf32>
    %c8_60 = arith.constant 8 : index
    %c0_61 = arith.constant 0 : index
    %125 = vector.load %arg13[%c8_60, %c0_61] : memref<16x32xf32, #tpu.memory_space<vmem>>, vector<8x32xf32>
    tpu.vector_store %arg13[%c8_60, %c0_61], %124 {strides = array<i32>} : memref<16x32xf32, #tpu.memory_space<vmem>>, vector<8x32xf32>,
    %c0_62 = arith.constant 0 : index
    %c0_63 = arith.constant 0 : index
    %126 = vector.load %arg13[%c0_62, %c0_63] : memref<16x32xf32, #tpu.memory_space<vmem>>, vector<16x32xf32>
    %c0_64 = arith.constant 0 : index
    %c0_65 = arith.constant 0 : index
    %127 = vector.load %arg12[%c0_64, %c0_65] : memref<16x32xf32, #tpu.memory_space<vmem>>, vector<16x32xf32>
    tpu.vector_store %arg12[%c0_64, %c0_65], %126 {strides = array<i32>} : memref<16x32xf32, #tpu.memory_space<vmem>>, vector<16x32xf32>,
    return
  }
  func.func @transform_0(%arg0: i32) -> (i32, i32) {
    %c0_i32 = arith.constant 0 : i32
    %c0_i32_0 = arith.constant 0 : i32
    return %arg0, %c0_i32 : i32, i32
  }
  func.func @transform_1(%arg0: i32) -> (i32, i32) {
    %c0_i32 = arith.constant 0 : i32
    %c0_i32_0 = arith.constant 0 : i32
    return %arg0, %c0_i32 : i32, i32
  }
  func.func @transform_2(%arg0: i32) -> (i32, i32) {
    %c0_i32 = arith.constant 0 : i32
    %c0_i32_0 = arith.constant 0 : i32
    return %arg0, %c0_i32 : i32, i32
  }
  func.func @transform_3(%arg0: i32) -> (i32, i32) {
    %c0_i32 = arith.constant 0 : i32
    %c0_i32_0 = arith.constant 0 : i32
    %c0_i32_1 = arith.constant 0 : i32
    return %c0_i32, %c0_i32_0 : i32, i32
  }
  func.func @transform_4(%arg0: i32) -> (i32, i32) {
    %c0_i32 = arith.constant 0 : i32
    %c0_i32_0 = arith.constant 0 : i32
    %c0_i32_1 = arith.constant 0 : i32
    return %c0_i32, %c0_i32_0 : i32, i32
  }
  func.func @transform_5(%arg0: i32) -> (i32, i32) {
    %c0_i32 = arith.constant 0 : i32
    %c0_i32_0 = arith.constant 0 : i32
    %c0_i32_1 = arith.constant 0 : i32
    return %c0_i32, %c0_i32_0 : i32, i32
  }
  func.func @transform_6(%arg0: i32) -> (i32, i32) {
    %c0_i32 = arith.constant 0 : i32
    %c0_i32_0 = arith.constant 0 : i32
    %c0_i32_1 = arith.constant 0 : i32
    return %c0_i32, %c0_i32_0 : i32, i32
  }
  func.func @transform_7(%arg0: i32) -> (i32, i32) {
    %c0_i32 = arith.constant 0 : i32
    %c0_i32_0 = arith.constant 0 : i32
    %c0_i32_1 = arith.constant 0 : i32
    return %c0_i32, %c0_i32_0 : i32, i32
  }
  func.func @transform_8(%arg0: i32) -> (i32, i32) {
    %c0_i32 = arith.constant 0 : i32
    %c0_i32_0 = arith.constant 0 : i32
    %c0_i32_1 = arith.constant 0 : i32
    return %c0_i32, %c0_i32_0 : i32, i32
  }
  func.func @transform_9(%arg0: i32) -> (i32, i32) {
    %c0_i32 = arith.constant 0 : i32
    %c0_i32_0 = arith.constant 0 : i32
    %c0_i32_1 = arith.constant 0 : i32
    return %c0_i32, %c0_i32_0 : i32, i32
  }
  func.func @transform_10(%arg0: i32) -> (i32, i32) {
    %c0_i32 = arith.constant 0 : i32
    %c0_i32_0 = arith.constant 0 : i32
    %c0_i32_1 = arith.constant 0 : i32
    return %c0_i32, %c0_i32_0 : i32, i32
  }
  func.func @transform_11(%arg0: i32) -> (i32, i32) {
    %c0_i32 = arith.constant 0 : i32
    %c0_i32_0 = arith.constant 0 : i32
    return %arg0, %c0_i32 : i32, i32
  }
}

</mosaic_0001>

<bundles_post_ra>
// kernel: tpu_custom_call.1
= control target key start
LH: loop header
LB: loop body
LE: loop exit
PB: predicated region body
PF: predicated region fallthrough
CT: control target
= control target key end

     0   :  { %16 = vsyncpa [#allocation4], 0  ;;  %s1120_s0 = inlined_call_operand.hbm [shape: f32[16,32], index: 0, kind: input, shape index: {}]   ;;  %s1121_s1 = inlined_call_operand.hbm [shape: f32[16,32], index: 1, kind: input, shape index: {}]   ;;  %s1122_s2 = inlined_call_operand.hbm [shape: f32[16,32], index: 2, kind: input, shape index: {}]   ;;  %s1123_s3 = inlined_call_operand.hbm [shape: bf16[32,32], index: 3, kind: input, shape index: {}]   ;;  %s1124_s4 = inlined_call_operand.vmem [shape: f32[1,32], index: 4, kind: input, shape index: {}]   ;;  %s1125_s5 = inlined_call_operand.hbm [shape: bf16[32,32], index: 5, kind: input, shape index: {}]   ;;  %s1126_s6 = inlined_call_operand.vmem [shape: f32[1,32], index: 6, kind: input, shape index: {}]   ;;  %s1127_s7 = inlined_call_operand.hbm [shape: bf16[32,32], index: 7, kind: input, shape index: {}]   ;;  %s1128_s8 = inlined_call_operand.vmem [shape: f32[1,32], index: 8, kind: input, shape index: {}]   ;;  %s1129_s9 = inlined_call_operand.hbm [shape: bf16[32,32], index: 9, kind: input, shape index: {}]   ;;  %s1130_s10 = inlined_call_operand.vmem [shape: f32[1,32], index: 10, kind: input, shape index: {}]   ;;  %s1131_s11 = inlined_call_operand.hbm [shape: f32[16,32], index: 11, kind: output, shape index: {}]  }
   0x1   :  { %17 = vsyncpa [#allocation7], 0 }
   0x2   :  { %18 = vsyncpa [#allocation10], 0 }
   0x3   :  { %19 = vsyncpa [#allocation13], 0 }
   0x4   :  { %20 = vsyncpa [#allocation5], 0  ;;  %s38_s19 = sshll.u32 %s1121_s1, 4  ;;  %s930_s20 = smov [#allocation6]   ;;  %s39_s19 = int_to_ptr.hbm [resolvable:$true] %s38_s19 }
   0x5   :  { %s40_s21 = sshll.u32 %s930_s20, 4  ;;  %s64_s24 = sshll.u32 %s1123_s3, 4  ;;  %s41_s21 = int_to_ptr.vmem [resolvable:$true] %s40_s21  ;;  %s65_s24 = int_to_ptr.hbm [resolvable:$true] %s64_s24 }
   0x6   :  { %s931_s25 = smov 128   ;;  %s932_s26 = smov 8  }
   0x7   :  { %46 = dma.hbm_to_vmem [thread:$0]  %s39_s19, 256, %s41_s21, [#allocation7], %s931_s25, %s931_s25, %s932_s26  }
   0x8   :  { %s933_s27 = smov [#allocation9]   ;;  %s934_s29 = smov 64  }
   0x9   :  { %s66_s28 = sshll.u32 %s933_s27, 4  ;;  %s935_s1 = smov 4   ;;  %s67_s28 = int_to_ptr.vmem [resolvable:$true] %s66_s28 }
   0xa   :  { %72 = dma.hbm_to_vmem [thread:$0]  %s65_s24, 256, %s67_s28, [#allocation10], %s934_s29, %s934_s29, %s935_s1  }
   0xb   :  { %s94_s3 = sshll.u32 %s1127_s7, 4  ;;  %s936_s13 = smov [#allocation12]   ;;  %s95_s3 = int_to_ptr.hbm [resolvable:$true] %s94_s3 }
   0xc   :  { %s96_s14 = sshll.u32 %s936_s13, 4  ;;  %s25_s17 = sshll.u32 %s1120_s0, 4  ;;  %s97_s14 = int_to_ptr.vmem [resolvable:$true] %s96_s14  ;;  %s26_s17 = int_to_ptr.hbm [resolvable:$true] %s25_s17 }
   0xd   :  { %102 = dma.hbm_to_vmem [thread:$0]  %s95_s3, 256, %s97_s14, [#allocation13], %s934_s29, %s934_s29, %s935_s1  }
   0xe   :  { %s937_s18 = smov [#allocation3]   ;;  %s51_s22 = sshll.u32 %s1122_s2, 4  ;;  %s52_s22 = int_to_ptr.hbm [resolvable:$true] %s51_s22 }
   0xf   :  { %s27_s19 = sshll.u32 %s937_s18, 4  ;;  %s79_s0 = sshll.u32 %s1125_s5, 4  ;;  %s28_s19 = int_to_ptr.vmem [resolvable:$true] %s27_s19  ;;  %s80_s0 = int_to_ptr.hbm [resolvable:$true] %s79_s0 }
  0x10   :  { %33 = dma.hbm_to_vmem [thread:$0]  %s26_s17, 256, %s28_s19, [#allocation4], %s931_s25, %s931_s25, %s932_s26  }
  0x11   :  { %s938_s24 = smov [#allocation8]   ;;  %s939_s28 = smov [#allocation11]  }
  0x12   :  { %s53_s27 = sshll.u32 %s938_s24, 4  ;;  %s81_s2 = sshll.u32 %s939_s28, 4  ;;  %s54_s27 = int_to_ptr.vmem [resolvable:$true] %s53_s27  ;;  %s82_s2 = int_to_ptr.vmem [resolvable:$true] %s81_s2 }
  0x13   :  { %59 = dma.hbm_to_vmem [thread:$0]  %s52_s22, 256, %s54_s27, [#allocation7], %s931_s25, %s931_s25, %s932_s26  }
  0x14   :  { %s109_s3 = sshll.u32 %s1129_s9, 4  ;;  %s940_s5 = smov [#allocation14]   ;;  %s110_s3 = int_to_ptr.hbm [resolvable:$true] %s109_s3 }
  0x15   :  { %87 = dma.hbm_to_vmem [thread:$0]  %s80_s0, 256, %s82_s2, [#allocation10], %s934_s29, %s934_s29, %s935_s1  }
  0x16   :  { %s111_s13 = sshll.u32 %s940_s5, 4  ;;  %s112_s13 = int_to_ptr.vmem [resolvable:$true] %s111_s13 }
  0x17   :  { %117 = dma.hbm_to_vmem [thread:$0]  %s110_s3, 256, %s112_s13, [#allocation13], %s934_s29, %s934_s29, %s935_s1  }
  0x18   :  { %920 = dma.done.wait [#allocation4], 256  }
  0x19   :  { %921 = vsyncadd [#allocation4], 4294967040 }
  0x1a   :  { %922 = dma.done.wait [#allocation7], 512  }
  0x1b   :  { %923 = vsyncadd [#allocation7], 4294966784 }
  0x1c   :  { %924 = dma.done.wait [#allocation10], 512  }
  0x1d   :  { %925 = vsyncadd [#allocation10], 4294966784 }
  0x1e   :  { %926 = dma.done.wait [#allocation13], 512  }
  0x1f   :  { %927 = vsyncadd [#allocation13], 4294966784  ;;  %v688_v0 = vld [vmem:[#allocation9 + $0x8] sm:$0xff]  ;;  %v690_v1 = vld [vmem:[#allocation11 + $0x8] sm:$0xff]  ;;  %vm178_vm0 = vcmask 261120   ;;  %vm289_vm1 = vcmask 130048  }
  0x20   :  { %v687_v2 = vld [vmem:[#allocation9] sm:$0xff]  ;;  %v689_v3 = vld [vmem:[#allocation11] sm:$0xff]  ;;  %v150_v5 = vld [vmem:[#allocation3 + $0x8] sm:$0xff]  ;;  %188 = vmatpush.bf16.msra.mxu0 %v688_v0  ;;  %225 = vmatpush.bf16.msra.mxu1 %v690_v1  ;;  %vm325_vm2 = vcmask 1043456   ;;  %vm309_vm3 = vcmask 64512   ;;  %s624_s20 = sshll.u32 %s1131_s11, 4  ;;  %s625_s20 = int_to_ptr.hbm [resolvable:$true] %s624_s20 }
  0x21   :  { %v149_v4 = vld [vmem:[#allocation3] sm:$0xff]  ;;  %v152_v6 = vld [vmem:[#allocation6] sm:$0xff]  ;;  %v153_v7 = vld [vmem:[#allocation6 + $0x8] sm:$0xff] }
  0x22   :  { %v151_v8 = vpack.c.bf16 %v150_v5, %v149_v4  ;;  %v154_v9 = vpack.c.bf16 %v153_v7, %v152_v6  ;;  %v1047_v10 = vld [vmem:[#allocation14] sm:$0xff]  ;;  %v692_v11 = vld [vmem:[#allocation12 + $0x8] sm:$0xff]  ;;  %v691_v12 = vld [vmem:[#allocation12] sm:$0xff] }
  0x23   :  { %262 = vmatpush.bf16.msra.mxu2 %v692_v11  ;;  %v155_v13 = vld [vmem:[#allocation8] sm:$0xff]  ;;  %v156_v14 = vld [vmem:[#allocation8 + $0x8] sm:$0xff]  ;;  %v1054_v16 = vld [vmem:[%s1124_s4] ss:$0 sm:$0xff]  ;;  %s941_s4 = smov 112  }
  0x24   :  { %189 = vmatpush.bf16.msra.mxu0 %v687_v2  ;;  %226 = vmatpush.bf16.msra.mxu1 %v689_v3  ;;  %v157_v15 = vpack.c.bf16 %v156_v14, %v155_v13  ;;  %v709_v17 = vld [vmem:[%s1126_s6] ss:$0 sm:$0xff]  ;;  %v694_v63 = vld [vmem:[#allocation14 + $0x8] sm:$0xff] }
  0x25   :  { %v710_v34 = vld [vmem:[%s1128_s8] ss:$0 sm:$0xff] }
  0x27   :  { %648 = vmatmul.msk.bf16.vlgmr.msra.gmra.mxu0 %vm178_vm0, %v151_v8  ;;  %657 = vmatmul.msk.bf16.vlgmr.msra.gmra.mxu1 %vm178_vm0, %v154_v9 }
  0x28   :  { %360 = vmatpush.bf16.msrb.mxu1 %v1047_v10  ;;  %263 = vmatpush.bf16.msra.mxu2 %v691_v12 }
  0x2b   :  { %666 = vmatmul.msk.bf16.vlgmr.msra.gmra.mxu2 %vm178_vm0, %v157_v15 }
  0xa4   :  { %v191_v18 = vpop.f32.mrf.mxu0  ;;  %v228_v19 = vpop.f32.mrf.mxu1 }
  0xa5   :  { %v192_v20 = vadd.f32 %v1054_v16, %v191_v18  ;;  %v229_v21 = vadd.f32 %v709_v17, %v228_v19 }
  0xa7   :  { %v270_v22 = vmul.f32 0.25, %v192_v20  ;;  %v274_v23 = vpack.c.bf16 %v229_v21, %v229_v21 }
  0xa9   :  { %v272_v24 = vpack.c.bf16 %v270_v22, %v270_v22  ;;  %v294_v25 = vsel %vm289_vm1, %v274_v23, 0  ;;  %v374_v26 = vunpack.c.l.b16 %v274_v23 }
  0xaa   :  { %303 = vmatpush.bf16.xpose.msra.mxu3 %v294_v25 }
  0xab   :  { %v375_v27 = vpack.c.b16 %v374_v26, %v374_v26  ;;  %v369_v29 = vunpack.c.l.b16 %v272_v24 }
  0xac   :  { %v230_v28 = vpop.f32.mrf.mxu1  ;;  %v193_v7 = vpop.f32.mrf.mxu0 }
  0xad   :  { %v231_v30 = vadd.f32 %v709_v17, %v230_v28  ;;  %376 = vrot.lane.b32.xlu0 %v375_v27, %s941_s4  ;;  %v370_v33 = vpack.c.b16 %v369_v29, %v369_v29  ;;  %v194_v9 = vadd.f32 %v1054_v16, %v193_v7 }
  0xae   :  { %v265_v37 = vpop.f32.mrf.mxu2 }
  0xaf   :  { %v275_v31 = vpack.c.bf16 %v231_v30, %v231_v30  ;;  %v266_v38 = vadd.f32 %v710_v34, %v265_v37  ;;  %v271_v11 = vmul.f32 0.25, %v194_v9 }
  0xb1   :  { %v463_v32 = vsel %vm289_vm1, %v275_v31, 0  ;;  %667 = vmatmul.msk.bf16.vlgmr.msra.gmra.mxu3 %vm289_vm1, %v272_v24  ;;  %v276_v39 = vpack.c.bf16 %v266_v38, %v266_v38  ;;  %v535_v61 = vunpack.c.l.b16 %v275_v31  ;;  %v273_v14 = vpack.c.bf16 %v271_v11, %v271_v11  ;;  %v711_v24 = vld [vmem:[%s1130_s10] ss:$0 sm:$0xff]  ;;  %s942_s10 = smov [#allocation15]  }
  0xb2   :  { %472 = vmatpush.bf16.xpose.msra.mxu1 %v463_v32  ;;  %287 = vst.msk [vmem:[#allocation2] sm:$0xff] %vm178_vm0, %v711_v24  ;;  %s622_s17 = sshll.u32 %s942_s10, 4  ;;  %s623_s17 = int_to_ptr.vmem [resolvable:$true] %s622_s17 }
  0xb3   :  { %v410_v40 = vunpack.c.l.b16 %v276_v39  ;;  %v327_v41 = vsel %vm325_vm2, %v276_v39, 0  ;;  %v536_v62 = vpack.c.b16 %v535_v61, %v535_v61  ;;  %v530_v15 = vunpack.c.l.b16 %v273_v14  ;;  %288 = vst.msk [vmem:[#allocation2 + $0x8] sm:$0xff] %vm178_vm0, %v711_v24 }
  0xb4   :  { %336 = vmatpush.bf16.msrb.mxu0 %v327_v41 }
  0xb5   :  { %371 = vrot.lane.b32.xlu0 %v370_v33, %s941_s4  ;;  %v411_v43 = vpack.c.b16 %v410_v40, %v410_v40  ;;  %v531_v17 = vpack.c.b16 %v530_v15, %v530_v15 }
  0xb6   :  { %v267_v44 = vpop.f32.mrf.mxu2 }
  0xb7   :  { %v268_v45 = vadd.f32 %v710_v34, %v267_v44 }
  0xb8   :  { %451 = vmatpush.bf16.msra.mxu0 %v694_v63 }
  0xb9   :  { %v1072_v46 = vpack.c.bf16 %v268_v45, %v268_v45  ;;  %v342_v27 = vld [vmem:[#allocation2] sm:$0xff] }
  0xba   :  { %v509_v7 = vld [vmem:[#allocation2 + $0x8] sm:$0xff] }
  0xbb   :  { %v494_v47 = vsel %vm325_vm2, %v1072_v46, 0 }
  0xbd   :  { %412 = vrot.lane.b32.xlu0 %v411_v43, %s941_s4 }
 0x11f   :  { %v377_v35 = vpop.permute.xlu0 %376 }
 0x120   :  { %v382_v36 = vsel %vm289_vm1, %v377_v35, 0 }
 0x121   :  { %391 = vmatpush.bf16.xpose.msrb.mxu2 %v382_v36 }
 0x127   :  { %v372_v42 = vpop.permute.xlu0 %371 }
 0x128   :  { %674 = vmatmul.msk.bf16.vlgmr.msrb.gmra.mxu2 %vm289_vm1, %v372_v42 }
 0x129   :  { %503 = vmatpush.bf16.msra.mxu2 %v494_v47 }
 0x12d   :  { %606 = vmatpush.bf16.msrb.mxu2 %v694_v63 }
 0x12f   :  { %v413_v51 = vpop.permute.xlu0 %412 }
 0x130   :  { %v418_v52 = vsel %vm325_vm2, %v413_v51, 0 }
 0x131   :  { %427 = vmatpush.bf16.msrb.mxu3 %v418_v52 }
 0x134   :  { %v305_v48 = vpop.f32.mrf.mxu3 }
 0x135   :  { %v310_v49 = vsel %vm309_vm3, %v305_v48, -inf  ;;  %521 = vmatpush.bf16.msra.mxu3 %v1047_v10 }
 0x136   :  { %311 = vmax.xlane.f32.xlu1 %v310_v49 }
 0x13c   :  { %v307_v50 = vpop.f32.mrf.mxu3 }
 0x1a9   :  { %v312_v53 = vpop.xlane.xlu1 %311 }
 0x1aa   :  { %v313_v54 = vsub.f32 %v305_v48, %v312_v53 }
 0x1ab   :  { %v393_v55 = vpop.f32.mrf.mxu2 }
 0x1ac   :  { %v314_v56 = vmul.f32 1.442695, %v313_v54  ;;  %v397_v57 = vsel %vm309_vm3, %v393_v55, -inf }
 0x1ad   :  { %398 = vmax.xlane.f32.xlu1 %v397_v57 }
 0x1ae   :  { %712 = vpow2.f32 %v314_v56 }
 0x1b3   :  { %v395_v58 = vpop.f32.mrf.mxu2 }
 0x1b4   :  { %v713_v59 = vpop.eup %712 }
 0x1b5   :  { %v316_v60 = vsel %vm309_vm3, %v713_v59, 0.0 }
 0x1b6   :  { %317 = vadd.xlane.f32.xlu2 %v316_v60 }
 0x1c6   :  { %537 = vrot.lane.b32.xlu1 %v536_v62, %s941_s4 }
 0x220   :  { %v399_v0 = vpop.xlane.xlu1 %398 }
 0x221   :  { %v400_v1 = vsub.f32 %v393_v55, %v399_v0 }
 0x223   :  { %v401_v2 = vmul.f32 1.442695, %v400_v1 }
 0x225   :  { %714 = vpow2.f32 %v401_v2 }
 0x229   :  { %v318_v3 = vpop.xlane.xlu2 %317 }
 0x22a   :  { %716 = vrcp.f32 %v318_v3 }
 0x22b   :  { %v715_v4 = vpop.eup %714 }
 0x22c   :  { %v403_v5 = vsel %vm309_vm3, %v715_v4, 0.0 }
 0x22d   :  { %404 = vadd.xlane.f32.xlu2 %v403_v5 }
 0x230   :  { %v717_v6 = vpop.eup %716 }
 0x231   :  { %v320_v8 = vmul.f32 %v717_v6, %v713_v59  ;;  %v571_v59 = vunpack.c.l.b16 %v1072_v46 }
 0x233   :  { %v321_v10 = vpack.c.bf16 %v320_v8, %v320_v8  ;;  %v572_v60 = vpack.c.b16 %v571_v59, %v571_v59 }
 0x235   :  { %668 = vmatmul.msk.bf16.vlgmr.msrb.gmra.mxu0 %vm309_vm3, %v321_v10 }
 0x238   :  { %v538_v12 = vpop.permute.xlu1 %537 }
 0x239   :  { %v543_v13 = vsel %vm289_vm1, %v538_v12, 0 }
 0x23a   :  { %552 = vmatpush.bf16.xpose.msrb.mxu0 %v543_v13 }
 0x245   :  { %532 = vrot.lane.b32.xlu2 %v531_v17, %s941_s4 }
 0x2a0   :  { %v405_v18 = vpop.xlane.xlu2 %404 }
 0x2a1   :  { %718 = vrcp.f32 %v405_v18 }
 0x2a7   :  { %v719_v19 = vpop.eup %718 }
 0x2a8   :  { %v407_v20 = vmul.f32 %v719_v19, %v715_v4  ;;  %v533_v32 = vpop.permute.xlu2 %532 }
 0x2aa   :  { %v408_v21 = vpack.c.bf16 %v407_v20, %v407_v20 }
 0x2ac   :  { %675 = vmatmul.msk.bf16.vlgmr.msrb.gmra.mxu3 %vm309_vm3, %v408_v21 }
 0x2b2   :  { %v338_v16 = vpop.f32.mrf.mxu0 }
 0x2b3   :  { %v343_v22 = vpack.c.bf16 %v338_v16, %v338_v16 }
 0x2b5   :  { %673 = vmatmul.msk.bf16.vlgmr.msrb.gmra.mxu1 %vm289_vm1, %v343_v22 }
 0x2ba   :  { %v340_v23 = vpop.f32.mrf.mxu0 }
 0x2c5   :  { %681 = vmatmul.msk.bf16.vlgmr.msra.gmra.mxu1 %vm289_vm1, %v273_v14 }
 0x32f   :  { %v429_v25 = vpop.f32.mrf.mxu3 }
 0x330   :  { %v434_v26 = vpack.c.bf16 %v429_v25, %v429_v25 }
 0x332   :  { %v362_v28 = vpop.f32.mrf.mxu1  ;;  %680 = vmatmul.msk.bf16.vlgmr.msra.gmra.mxu0 %vm289_vm1, %v434_v26 }
 0x333   :  { %v366_v29 = vadd.f32 %v362_v28, %v342_v27 }
 0x335   :  { %367 = vst.msk [vmem:[#allocation2] sm:$0xff] %vm178_vm0, %v366_v29 }
 0x337   :  { %v431_v30 = vpop.f32.mrf.mxu3 }
 0x33a   :  { %v364_v31 = vpop.f32.mrf.mxu1 }
 0x33c   :  { %v433_v36 = vld [vmem:[#allocation2] sm:$0xff] }
 0x342   :  { %v474_v33 = vpop.f32.mrf.mxu1  ;;  %684 = vmatmul.msk.bf16.vlgmr.msrb.gmra.mxu0 %vm289_vm1, %v533_v32 }
 0x343   :  { %v478_v34 = vsel %vm309_vm3, %v474_v33, -inf }
 0x344   :  { %479 = vmax.xlane.f32.xlu0 %v478_v34 }
 0x34a   :  { %v476_v35 = vpop.f32.mrf.mxu1 }
 0x3af   :  { %v453_v37 = vpop.f32.mrf.mxu0 }
 0x3b0   :  { %v457_v38 = vadd.f32 %v453_v37, %v433_v36 }
 0x3b2   :  { %458 = vst.msk [vmem:[#allocation2] sm:$0xff] %vm178_vm0, %v457_v38 }
 0x3b7   :  { %v480_v39 = vpop.xlane.xlu0 %479  ;;  %v455_v40 = vpop.f32.mrf.mxu0 }
 0x3b8   :  { %v481_v41 = vsub.f32 %v474_v33, %v480_v39 }
 0x3b9   :  { %v614_v42 = vld [vmem:[#allocation2] sm:$0xff] }
 0x3ba   :  { %v482_v43 = vmul.f32 1.442695, %v481_v41  ;;  %616 = vst.msk [vmem:[#allocation15] sm:$0xff] %vm178_vm0, %v614_v42 }
 0x3bc   :  { %720 = vpow2.f32 %v482_v43 }
 0x3bf   :  { %v554_v44 = vpop.f32.mrf.mxu0 }
 0x3c0   :  { %v558_v45 = vsel %vm309_vm3, %v554_v44, -inf }
 0x3c1   :  { %559 = vmax.xlane.f32.xlu2 %v558_v45 }
 0x3c2   :  { %v721_v47 = vpop.eup %720 }
 0x3c3   :  { %v484_v48 = vsel %vm309_vm3, %v721_v47, 0.0 }
 0x3c4   :  { %485 = vadd.xlane.f32.xlu1 %v484_v48 }
 0x3c7   :  { %v556_v49 = vpop.f32.mrf.mxu0 }
 0x434   :  { %v560_v50 = vpop.xlane.xlu2 %559 }
 0x435   :  { %v561_v51 = vsub.f32 %v554_v44, %v560_v50 }
 0x437   :  { %v562_v52 = vmul.f32 1.442695, %v561_v51  ;;  %v486_v53 = vpop.xlane.xlu1 %485 }
 0x438   :  { %722 = vrcp.f32 %v486_v53 }
 0x439   :  { %724 = vpow2.f32 %v562_v52 }
 0x43e   :  { %v723_v54 = vpop.eup %722 }
 0x43f   :  { %v725_v55 = vpop.eup %724  ;;  %v488_v56 = vmul.f32 %v723_v54, %v721_v47 }
 0x440   :  { %v564_v57 = vsel %vm309_vm3, %v725_v55, 0.0 }
 0x441   :  { %v489_v58 = vpack.c.bf16 %v488_v56, %v488_v56  ;;  %565 = vadd.xlane.f32.xlu0 %v564_v57 }
 0x443   :  { %682 = vmatmul.msk.bf16.vlgmr.msra.gmra.mxu2 %vm309_vm3, %v489_v58 }
 0x455   :  { %573 = vrot.lane.b32.xlu0 %v572_v60, %s941_s4 }
 0x4b4   :  { %v566_v61 = vpop.xlane.xlu0 %565 }
 0x4b5   :  { %726 = vrcp.f32 %v566_v61 }
 0x4bb   :  { %v727_v62 = vpop.eup %726 }
 0x4bc   :  { %v568_v63 = vmul.f32 %v727_v62, %v725_v55 }
 0x4be   :  { %v569_v4 = vpack.c.bf16 %v568_v63, %v568_v63 }
 0x4c6   :  { %v505_v0 = vpop.f32.mrf.mxu2 }
 0x4c7   :  { %v510_v1 = vpack.c.bf16 %v505_v0, %v505_v0  ;;  %v574_v2 = vpop.permute.xlu0 %573 }
 0x4c8   :  { %v579_v3 = vsel %vm325_vm2, %v574_v2, 0 }
 0x4c9   :  { %683 = vmatmul.msk.bf16.vlgmr.msra.gmra.mxu3 %vm289_vm1, %v510_v1  ;;  %588 = vmatpush.bf16.msrb.mxu1 %v579_v3 }
 0x4cc   :  { %685 = vmatmul.msk.bf16.vlgmr.msrb.gmra.mxu1 %vm309_vm3, %v569_v4 }
 0x4ce   :  { %v507_v5 = vpop.f32.mrf.mxu2 }
 0x549   :  { %v590_v46 = vpop.f32.mrf.mxu1 }
 0x54a   :  { %v595_v6 = vpack.c.bf16 %v590_v46, %v590_v46 }
 0x54c   :  { %v523_v8 = vpop.f32.mrf.mxu3  ;;  %686 = vmatmul.msk.bf16.vlgmr.msrb.gmra.mxu2 %vm289_vm1, %v595_v6 }
 0x54d   :  { %v527_v9 = vadd.f32 %v523_v8, %v509_v7 }
 0x54f   :  { %528 = vst.msk [vmem:[#allocation2 + $0x8] sm:$0xff] %vm178_vm0, %v527_v9 }
 0x551   :  { %v592_v10 = vpop.f32.mrf.mxu1 }
 0x554   :  { %v525_v11 = vpop.f32.mrf.mxu3 }
 0x556   :  { %v594_v12 = vld [vmem:[#allocation2 + $0x8] sm:$0xff] }
 0x5cf   :  { %v608_v13 = vpop.f32.mrf.mxu2 }
 0x5d0   :  { %v612_v14 = vadd.f32 %v608_v13, %v594_v12 }
 0x5d2   :  { %613 = vst.msk [vmem:[#allocation2 + $0x8] sm:$0xff] %vm178_vm0, %v612_v14 }
 0x5d7   :  { %v610_v15 = vpop.f32.mrf.mxu2 }
 0x5d9   :  { %v615_v17 = vld [vmem:[#allocation2 + $0x8] sm:$0xff] }
 0x5da   :  { %617 = vst.msk [vmem:[#allocation15 + $0x8] sm:$0xff] %vm178_vm0, %v615_v17 }
 0x5db   :  { %630 = dma.vmem_to_hbm [thread:$0]  %s623_s17, 256, %s625_s20, [#allocation5], %s931_s25, %s931_s25, %s932_s26  }
 0x5dc   :  { %928 = dma.done.wait [#allocation5], 256  }
 0x5dd   :  { %929 = vsyncadd [#allocation5], 4294967040 }
 0x5de   :  { %635 = vsyncpa [#allocation4], 1 }
 0x5df   :  { %636 = vsyncpa [#allocation7], 1 }
 0x5e0   :  { %637 = vsyncpa [#allocation10], 1 }
 0x5e1   :  { %638 = vsyncpa [#allocation13], 1 }
 0x5e2   :  { %639 = vsyncpa [#allocation5], 1 }

</bundles_post_ra>
